<compile_context>
chip_gen: v6e
topology: v6e:2x2x1
jax: 0.10.0
libtpu: 0.0.40
codegen_flags: <defaults>
</compile_context>

<pallas_src>
import functools

import numpy as np
import jax
import jax.numpy as jnp
from jax.experimental import pallas as pl
from jax.experimental.pallas import tpu as pltpu


# -----------------------------------------------------------------------------
# Pallas kernel: Bt cost-matrix slabs per grid step.
# -----------------------------------------------------------------------------
def _cost_matrix_kernel(coord_ref, cls_ref, tgt_ref, out_ref, *,
                        cost_class, cost_bbox, ndim, bt):
    """coord_ref: (Bt, Q_pad, D)     queries x coord-dim
       cls_ref  : (Bt, Q_pad, 1)     per-query class prob
       tgt_ref  : (Bt, D, T_pad)     targets transposed, T on the lane axis
       out_ref  : (Bt, Q_pad, T_pad) cost matrices
    """
    for b in range(bt):                     # statically unrolled over the slab
        coords = coord_ref[b]               # (Q_pad, D)
        tgts = tgt_ref[b]                   # (D, T_pad)
        cls = cls_ref[b]                    # (Q_pad, 1)

        # Unrolled L1 accumulation over the tiny static coordinate dimension.
        # acc starts from the first term — no zero init, no extra full-tile add.
        acc = jnp.abs(coords[:, 0:1] - tgts[0:1, :])          # (Q_pad, T_pad)
        for d in range(1, ndim):
            acc = acc + jnp.abs(coords[:, d:d + 1] - tgts[d:d + 1, :])

        # Hoisted class term: one (Q_pad, 1) column broadcast across all lanes.
        out_ref[b, :, :] = cost_bbox * acc + cost_class * (1.0 - cls)


# -----------------------------------------------------------------------------
# One jitted executable per (weights, shape) combination: pad + transpose +
# pallas_call all fuse into a single dispatch.  Output stays PADDED; the host
# slices it with NumPy before the Hungarian solve.
# -----------------------------------------------------------------------------
@functools.lru_cache(maxsize=None)
def _build_cost_fn(cost_class, cost_bbox, B, Q, D, T):
    q_pad = max(8, ((Q + 7) // 8) * 8)          # sublane multiple
    t_pad = max(128, ((T + 127) // 128) * 128)  # lane multiple (full vst)
    bt = max(1, min(B, 8))                      # batch slab per grid step
    b_pad = ((B + bt - 1) // bt) * bt
    grid = (b_pad // bt,)

    kernel = functools.partial(
        _cost_matrix_kernel,
        cost_class=float(cost_class),
        cost_bbox=float(cost_bbox),
        ndim=D,
        bt=bt,
    )

    call = pl.pallas_call(
        kernel,
        out_shape=jax.ShapeDtypeStruct((b_pad, q_pad, t_pad), jnp.float32),
        grid_spec=pl.GridSpec(
            grid=grid,
            in_specs=[
                pl.BlockSpec((bt, q_pad, D), lambda g: (g, 0, 0)),
                pl.BlockSpec((bt, q_pad, 1), lambda g: (g, 0, 0)),
                pl.BlockSpec((bt, D, t_pad), lambda g: (g, 0, 0)),
            ],
            out_specs=pl.BlockSpec((bt, q_pad, t_pad), lambda g: (g, 0, 0)),
        ),
        compiler_params=pltpu.CompilerParams(
            # Batch axis parallel: engages both TCs on v7x once grid >= 2.
            dimension_semantics=("parallel",),
            # Fuse the pad / transpose producers into the custom-call operands.
            allow_input_fusion=[True, True, True],
        ),
    )

    def fn(coord, cls, targets):
        # coord: (B, Q, D); cls: (B, Q); targets: (B, T, D) — all float32.
        coord_p = jnp.pad(coord, ((0, b_pad - B), (0, q_pad - Q), (0, 0)))
        cls_p = jnp.pad(cls[..., None], ((0, b_pad - B), (0, q_pad - Q), (0, 0)))
        tgt_p = jnp.pad(jnp.swapaxes(targets, 1, 2),            # T on lane axis
                        ((0, b_pad - B), (0, 0), (0, t_pad - T)))
        return call(coord_p, cls_p, tgt_p)                       # padded output

    return jax.jit(fn)


def compute_cost_matrices_padded(coord, cls, targets, *,
                                 cost_class=1.0, cost_bbox=1.0):
    """coord:   (B, Q, D) predictions
       cls:     (B, Q)    per-query class prob
       targets: (B, T, D) target points
       returns  (B_pad, Q_pad, T_pad) float32 padded cost matrices on device.
       Callers MUST slice [:B, :Q, :T] (on host) before any assignment."""
    coord = jnp.asarray(coord, jnp.float32)
    cls = jnp.asarray(cls, jnp.float32)
    targets = jnp.asarray(targets, jnp.float32)
    B, Q, D = coord.shape
    T = targets.shape[1]
    fn = _build_cost_fn(float(cost_class), float(cost_bbox), B, Q, D, T)
    return fn(coord, cls, targets)


# -----------------------------------------------------------------------------
# Host-side Hungarian solve (sequential; no Pallas equivalent — mirrors the
# original .cpu() + scipy.optimize.linear_sum_assignment path).
# -----------------------------------------------------------------------------
def _linear_sum_assignment_np(cost):
    """O(n^3) Hungarian algorithm (potentials / augmenting paths)."""
    cost = np.asarray(cost, dtype=np.float64)
    transposed = False
    if cost.shape[0] > cost.shape[1]:
        cost = cost.T
        transposed = True
    n, m = cost.shape
    INF = float("inf")
    u = np.zeros(n + 1)
    v = np.zeros(m + 1)
    p = np.zeros(m + 1, dtype=np.int64)
    way = np.zeros(m + 1, dtype=np.int64)
    for i in range(1, n + 1):
        p[0] = i
        j0 = 0
        minv = np.full(m + 1, INF)
        used = np.zeros(m + 1, dtype=bool)
        while True:
            used[j0] = True
            i0 = p[j0]
            delta = INF
            j1 = 0
            for j in range(1, m + 1):
                if not used[j]:
                    cur = cost[i0 - 1, j - 1] - u[i0] - v[j]
                    if cur < minv[j]:
                        minv[j] = cur
                        way[j] = j0
                    if minv[j] < delta:
                        delta = minv[j]
                        j1 = j
            for j in range(m + 1):
                if used[j]:
                    u[p[j]] += delta
                    v[j] -= delta
                else:
                    minv[j] -= delta
            j0 = j1
            if p[j0] == 0:
                break
        while True:
            j1 = way[j0]
            p[j0] = p[j1]
            j0 = j1
            if j0 == 0:
                break
    rows, cols = [], []
    for j in range(1, m + 1):
        if p[j] != 0:
            rows.append(p[j] - 1)
            cols.append(j - 1)
    rows = np.asarray(rows, dtype=np.int64)
    cols = np.asarray(cols, dtype=np.int64)
    if transposed:
        rows, cols = cols, rows
    order = np.argsort(rows, kind="stable")
    return rows[order], cols[order]


try:  # prefer scipy if present (same as the original module)
    from scipy.optimize import linear_sum_assignment as _lsa
except Exception:  # pragma: no cover
    _lsa = _linear_sum_assignment_np


# -----------------------------------------------------------------------------
# Module wrapper with the same forward semantics as the PyTorch HungarianMatcher.
# -----------------------------------------------------------------------------
class HungarianMatcher:
    def __init__(self, cost_class: float = 1.0, cost_bbox: float = 1.0):
        self.cost_class = float(cost_class)
        self.cost_bbox = float(cost_bbox)

    def __call__(self, total_points, total_points_class, coord_i, class_i):
        # bs = 1 in the original forward; total_points_class is unused there.
        del total_points_class
        coord = jnp.asarray(coord_i, jnp.float32)[None]              # (1, Q, D)
        cls = jnp.asarray(class_i, jnp.float32).reshape(-1)[None]    # (1, Q)
        tgt = jnp.asarray(total_points, jnp.float32)[None]           # (1, T, D)
        B, Q, _ = coord.shape
        T = tgt.shape[1]

        # Single jitted dispatch; returns the padded matrix asynchronously.
        C_pad = compute_cost_matrices_padded(coord, cls, tgt,
                                             cost_class=self.cost_class,
                                             cost_bbox=self.cost_bbox)
        # TODO(synk): when matching a stream of samples, dispatch the next
        # sample's jitted cost-matrix call here before blocking on this
        # device->host copy so the device kernel hides under the host solve.
        C_host = np.asarray(jax.device_get(C_pad))[:B, :Q, :T]       # host slice

        indices = [_lsa(C_host[b]) for b in range(B)]
        return [(np.asarray(i, dtype=np.int64), np.asarray(j, dtype=np.int64))
                for i, j in indices]


# -----------------------------------------------------------------------------
# Self-test.
# -----------------------------------------------------------------------------
if __name__ == "__main__":
    key = jax.random.PRNGKey(0)
    k1, k2, k3 = jax.random.split(key, 3)

    Q, T, D = 64, 36, 2
    coord_i = jax.random.uniform(k1, (Q, D), jnp.float32)
    class_i = jax.random.uniform(k2, (Q,), jnp.float32)
    total_points = jax.random.uniform(k3, (T, D), jnp.float32)
    total_points_class = jnp.ones((T,), jnp.float32) * 6.0

    # Run the Pallas cost-matrix kernel once and block on it.
    C_pad = compute_cost_matrices_padded(
        coord_i[None], class_i[None], total_points[None],
        cost_class=1.0, cost_bbox=1.0)
    C_pad = jax.block_until_ready(C_pad)
    C = np.asarray(jax.device_get(C_pad))[:1, :Q, :T]

    # Pure-NumPy reference for the cost matrix.
    c_np = np.asarray(coord_i, np.float32)
    t_np = np.asarray(total_points, np.float32)
    p_np = np.asarray(class_i, np.float32)
    ref = (np.abs(c_np[:, None, :] - t_np[None, :, :]).sum(-1)
           + (1.0 - p_np)[:, None])
    assert np.allclose(C[0], ref, rtol=1e-5, atol=1e-5), \
        "Pallas cost matrix mismatch vs NumPy reference"

    # Full matcher forward (host Hungarian solve), mirroring the PyTorch module.
    matcher = HungarianMatcher(cost_class=1.0, cost_bbox=1.0)
    indices = matcher(total_points, total_points_class, coord_i, class_i)
    assert len(indices) == 1
    i_idx, j_idx = indices[0]
    assert len(i_idx) == len(j_idx) == min(Q, T)

    print("KERNEL_OK")
</pallas_src>

<mosaic_0001>
module attributes {stable_mosaic.version = 11 : i64} {
  func.func @_cost_matrix_kernel(%arg0: i32, %arg1: memref<1x64x2xf32, #tpu.memory_space<vmem>>, %arg2: memref<1x64x1xf32, #tpu.memory_space<vmem>>, %arg3: memref<1x2x128xf32, #tpu.memory_space<vmem>>, %arg4: memref<1x64x128xf32, #tpu.memory_space<vmem>>) attributes {dimension_semantics = [#tpu.dimension_semantics<parallel>], iteration_bounds = array<i64: 1>, scalar_prefetch = 0 : i64, scratch_operands = 0 : i64, tpu.core_type = #tpu.core_type<tc>, window_params = [{transform_indices = @transform_0, window_bounds = array<i64: 1, 64, 2>}, {transform_indices = @transform_1, window_bounds = array<i64: 1, 64, 1>}, {transform_indices = @transform_2, window_bounds = array<i64: 1, 2, 128>}, {transform_indices = @transform_3, window_bounds = array<i64: 1, 64, 128>}]} {
    %c0 = arith.constant 0 : index
    %c0_0 = arith.constant 0 : index
    %c0_1 = arith.constant 0 : index
    %0 = vector.load %arg1[%c0, %c0_0, %c0_1] : memref<1x64x2xf32, #tpu.memory_space<vmem>>, vector<1x64x2xf32>
    %1 = vector.shape_cast %0 : vector<1x64x2xf32> to vector<64x2xf32>
    %c0_2 = arith.constant 0 : index
    %c0_3 = arith.constant 0 : index
    %c0_4 = arith.constant 0 : index
    %2 = vector.load %arg3[%c0_2, %c0_3, %c0_4] : memref<1x2x128xf32, #tpu.memory_space<vmem>>, vector<1x2x128xf32>
    %3 = vector.shape_cast %2 : vector<1x2x128xf32> to vector<2x128xf32>
    %c0_5 = arith.constant 0 : index
    %c0_6 = arith.constant 0 : index
    %c0_7 = arith.constant 0 : index
    %4 = vector.load %arg2[%c0_5, %c0_6, %c0_7] : memref<1x64x1xf32, #tpu.memory_space<vmem>>, vector<1x64x1xf32>
    %5 = vector.shape_cast %4 : vector<1x64x1xf32> to vector<64x1xf32>
    %6 = vector.extract_strided_slice %1 {offsets = [0, 0], sizes = [64, 1], strides = [1, 1]} : vector<64x2xf32> to vector<64x1xf32>
    %7 = vector.extract_strided_slice %3 {offsets = [0, 0], sizes = [1, 128], strides = [1, 1]} : vector<2x128xf32> to vector<1x128xf32>
    %8 = vector.broadcast %6 : vector<64x1xf32> to vector<64x128xf32>
    %9 = vector.broadcast %7 : vector<1x128xf32> to vector<64x128xf32>
    %10 = arith.subf %8, %9 : vector<64x128xf32>
    %11 = math.absf %10 : vector<64x128xf32>
    %12 = vector.extract_strided_slice %1 {offsets = [0, 1], sizes = [64, 1], strides = [1, 1]} : vector<64x2xf32> to vector<64x1xf32>
    %13 = vector.extract_strided_slice %3 {offsets = [1, 0], sizes = [1, 128], strides = [1, 1]} : vector<2x128xf32> to vector<1x128xf32>
    %14 = vector.broadcast %12 : vector<64x1xf32> to vector<64x128xf32>
    %15 = vector.broadcast %13 : vector<1x128xf32> to vector<64x128xf32>
    %16 = arith.subf %14, %15 : vector<64x128xf32>
    %17 = math.absf %16 : vector<64x128xf32>
    %18 = arith.addf %11, %17 : vector<64x128xf32>
    %cst = arith.constant 1.000000e+00 : f32
    %19 = vector.broadcast %cst : f32 to vector<64x128xf32>
    %20 = arith.mulf %19, %18 : vector<64x128xf32>
    %cst_8 = arith.constant 1.000000e+00 : f32
    %21 = vector.broadcast %cst_8 : f32 to vector<64x1xf32>
    %22 = arith.subf %21, %5 : vector<64x1xf32>
    %cst_9 = arith.constant 1.000000e+00 : f32
    %23 = vector.broadcast %cst_9 : f32 to vector<64x1xf32>
    %24 = arith.mulf %23, %22 : vector<64x1xf32>
    %25 = vector.broadcast %24 : vector<64x1xf32> to vector<64x128xf32>
    %26 = arith.addf %20, %25 : vector<64x128xf32>
    %c0_10 = arith.constant 0 : index
    %c0_11 = arith.constant 0 : index
    %c0_12 = arith.constant 0 : index
    %27 = vector.load %arg4[%c0_10, %c0_11, %c0_12] : memref<1x64x128xf32, #tpu.memory_space<vmem>>, vector<1x64x128xf32>
    %28 = vector.shape_cast %27 : vector<1x64x128xf32> to vector<64x128xf32>
    %29 = vector.shape_cast %26 : vector<64x128xf32> to vector<1x64x128xf32>
    tpu.vector_store %arg4[%c0_10, %c0_11, %c0_12], %29 {strides = array<i32>} : memref<1x64x128xf32, #tpu.memory_space<vmem>>, vector<1x64x128xf32>,
    return
  }
  func.func @transform_0(%arg0: i32) -> (i32, i32, i32) {
    %c0_i32 = arith.constant 0 : i32
    %c0_i32_0 = arith.constant 0 : i32
    %c0_i32_1 = arith.constant 0 : i32
    return %arg0, %c0_i32, %c0_i32_0 : i32, i32, i32
  }
  func.func @transform_1(%arg0: i32) -> (i32, i32, i32) {
    %c0_i32 = arith.constant 0 : i32
    %c0_i32_0 = arith.constant 0 : i32
    %c0_i32_1 = arith.constant 0 : i32
    return %arg0, %c0_i32, %c0_i32_0 : i32, i32, i32
  }
  func.func @transform_2(%arg0: i32) -> (i32, i32, i32) {
    %c0_i32 = arith.constant 0 : i32
    %c0_i32_0 = arith.constant 0 : i32
    %c0_i32_1 = arith.constant 0 : i32
    return %arg0, %c0_i32, %c0_i32_0 : i32, i32, i32
  }
  func.func @transform_3(%arg0: i32) -> (i32, i32, i32) {
    %c0_i32 = arith.constant 0 : i32
    %c0_i32_0 = arith.constant 0 : i32
    %c0_i32_1 = arith.constant 0 : i32
    return %arg0, %c0_i32, %c0_i32_0 : i32, i32, i32
  }
}

</mosaic_0001>

<bundles_post_ra>
// kernel: fn.2
= control target key start
LH: loop header
LB: loop body
LE: loop exit
PB: predicated region body
PF: predicated region fallthrough
CT: control target
= control target key end

     0   :  { %s378_s0 = inlined_call_operand.vmem [shape: f32[1,64,2], index: 0, kind: input, shape index: {}]   ;;  %s379_s1 = inlined_call_operand.vmem [shape: f32[1,64,1], index: 1, kind: input, shape index: {}]   ;;  %s380_s2 = inlined_call_operand.vmem [shape: f32[1,2,36], index: 2, kind: input, shape index: {}]   ;;  %s381_s3 = inlined_call_operand.<no memory space> [shape: f32[], index: 3, kind: input, shape index: {}]   ;;  %s382_s4 = inlined_call_operand.hbm [shape: f32[1,64,128], index: 4, kind: output, shape index: {}]  }
   0x1   :  { %v9_v0 = vstv %s381_s3 }
   0x2   :  { %v33_v1 = vld [vmem:[%s378_s0 + $0x10] sm:$0xff]  ;;  %v31_v2 = vld [vmem:[%s378_s0] sm:$0xff]  ;;  %v18_v3 = vlaneseq  ;;  %v280_v4 = vmov 1   ;;  %v281_v5 = vmov 0   ;;  %v34_v8 = vld [vmem:[%s378_s0 + $0x18] sm:$0xff] }
   0x3   :  { %254 = vset.pattern.permute.xlu0 %v280_v4  ;;  %253 = vset.pattern.permute.xlu1 %v281_v5  ;;  %v17_v9 = vld [vmem:[%s380_s2] sm:$0x3] }
   0x4   :  { %60 = vperm.xlu1 %253, %v33_v1   ;;  %109 = vperm.xlu0 %254, %v31_v2   ;;  %v319_v6 = vshrl.u32 %v18_v3, 7  ;;  %v24_v7 = vand.u32 127, %v18_v3 }
   0x6   :  { %vm21_vm0 = vcmp.lt.s32.totalorder %v319_v6, 2  ;;  %vm26_vm1 = vcmp.lt.s32.totalorder %v24_v7, 36 }
   0x8   :  { %65 = vperm.xlu1 %253, %v34_v8   ;;  %121 = vperm.xlu0 %254, %v34_v8  }
   0x9   :  { %10 = vsyncpa [#allocation8], 0  ;;  %v36_v10 = vld [vmem:[%s378_s0 + $0x28] sm:$0xff]  ;;  %v22_v11 = vsel %vm21_vm0, %v17_v9, %v9_v0  ;;  %v38_v13 = vld [vmem:[%s378_s0 + $0x38] sm:$0xff]  ;;  %v90_v41 = vsub.s32 0, %v319_v6  ;;  %v142_v45 = vsub.s32 1, %v319_v6 }
   0xa   :  { %v27_v12 = vsel %vm26_vm1, %v22_v11, %v9_v0  ;;  %v32_v14 = vld [vmem:[%s378_s0 + $0x8] sm:$0xff]  ;;  %v35_v15 = vld [vmem:[%s378_s0 + $0x20] sm:$0xff]  ;;  %v37_v16 = vld [vmem:[%s378_s0 + $0x30] sm:$0xff] }
   0xb   :  { %30 = vst [vmem:[#allocation9] sm:$0x3] %v27_v12  ;;  %v41_v17 = vld [vmem:[%s379_s1 + $0x8] sm:$0xff]  ;;  %v40_v18 = vld [vmem:[%s379_s1] sm:$0xff]  ;;  %v42_v22 = vld [vmem:[%s379_s1 + $0x10] sm:$0xff] }
   0xc   :  { %75 = vperm.xlu1 %253, %v36_v10   ;;  %129 = vperm.xlu0 %254, %v36_v10   ;;  %v169_v19 = vsub.f32 1.0, %v41_v17  ;;  %v168_v20 = vsub.f32 1.0, %v40_v18  ;;  %v44_v21 = vld [vmem:[%s379_s1 + $0x20] sm:$0xff]  ;;  %v170_v24 = vsub.f32 1.0, %v42_v22  ;;  %v46_v25 = vld [vmem:[%s379_s1 + $0x30] sm:$0xff]  ;;  %v43_v26 = vld [vmem:[%s379_s1 + $0x18] sm:$0xff] }
   0xd   :  { %v172_v23 = vsub.f32 1.0, %v44_v21  ;;  %v174_v27 = vsub.f32 1.0, %v46_v25  ;;  %v171_v28 = vsub.f32 1.0, %v43_v26  ;;  %v45_v29 = vld [vmem:[%s379_s1 + $0x28] sm:$0xff]  ;;  %v47_v31 = vld [vmem:[%s379_s1 + $0x38] sm:$0xff]  ;;  %s282_s1 = smov [#allocation7]  }
   0xe   :  { %v173_v30 = vsub.f32 1.0, %v45_v29  ;;  %v175_v32 = vsub.f32 1.0, %v47_v31  ;;  %s237_s3 = sshll.u32 %s282_s1, 4  ;;  %s238_s3 = int_to_ptr.vmem [resolvable:$true] %s237_s3 }
   0xf   :  { %s258_s22 = scalar_lea.vmem %s238_s3, 1024  ;;  %p263_p1 = scmp.lt.s32.totalorder %s238_s3, %s238_s3 }
  0x10   :  { %85 = vperm.xlu1 %253, %v38_v13   ;;  %137 = vperm.xlu0 %254, %v38_v13   ;;  %p259_p0 = scmp.ne.s32.totalorder %s238_s3, %s258_s22  ;;  %p264_p2 = scmp.lt.s32.totalorder %s258_s22, %s258_s22 }
  0x12   :  { %v39_v44 = vld [vmem:[#allocation9] sm:$0x3]  ;;  %p265_p3 = por %p264_p2, %p263_p1 }
  0x13   :  { %v91_v46 = vrot.slane %v39_v44, %v90_v41  ;;  %v143_v49 = vrot.slane %v39_v44, %v142_v45 }
  0x14   :  { %255 = vset.pattern.permute.xlu1 %v280_v4  ;;  %256 = vset.pattern.permute.xlu0 %v281_v5  ;;  %p266_p4 = pnand %p265_p3, %p259_p0 }
  0x15   :  { %113 = vperm.xlu1 %255, %v32_v14   ;;  %50 = vperm.xlu0 %256, %v31_v2  }
  0x19   :  { %117 = vperm.xlu1 %255, %v33_v1   ;;  %55 = vperm.xlu0 %256, %v32_v14  }
  0x1d   :  { %125 = vperm.xlu1 %255, %v35_v15   ;;  %70 = vperm.xlu0 %256, %v35_v15  }
  0x21   :  { %133 = vperm.xlu1 %255, %v37_v16   ;;  %80 = vperm.xlu0 %256, %v37_v16  }
  0x25   :  { %257 = vset.pattern.permute.xlu1 %v281_v5  ;;  %183 = vperm.xlu0 %256, %v169_v19  }
  0x26   :  { %178 = vperm.xlu1 %257, %v168_v20  }
  0x29   :  { %198 = vperm.xlu0 %256, %v172_v23  }
  0x2a   :  { %188 = vperm.xlu1 %257, %v170_v24  }
  0x2d   :  { %208 = vperm.xlu0 %256, %v174_v27  }
  0x2e   :  { %193 = vperm.xlu1 %257, %v171_v28  }
  0x32   :  { %203 = vperm.xlu1 %257, %v173_v30  }
  0x36   :  { %213 = vperm.xlu1 %257, %v175_v32  }
  0x7f   :  { %v61_v33 = vpop.permute.xlu1 %60  ;;  %v110_v34 = vpop.permute.xlu0 %109 }
  0x80   :  { %v144_v55 = vsub.f32 %v110_v34, %v143_v49  ;;  %v94_v0 = vsub.f32 %v61_v33, %v91_v46 }
  0x82   :  { %v152_v1 = vand.u32 2147483647, %v144_v55  ;;  %v102_v14 = vand.u32 2147483647, %v94_v0 }
  0x83   :  { %v66_v35 = vpop.permute.xlu1 %65  ;;  %v122_v36 = vpop.permute.xlu0 %121 }
  0x84   :  { %v95_v2 = vsub.f32 %v66_v35, %v91_v46  ;;  %v147_v3 = vsub.f32 %v122_v36, %v143_v49 }
  0x86   :  { %v103_v15 = vand.u32 2147483647, %v95_v2  ;;  %v155_v17 = vand.u32 2147483647, %v147_v3 }
  0x87   :  { %v76_v37 = vpop.permute.xlu1 %75  ;;  %v130_v38 = vpop.permute.xlu0 %129 }
  0x88   :  { %v97_v21 = vsub.f32 %v76_v37, %v91_v46  ;;  %v149_v22 = vsub.f32 %v130_v38, %v143_v49  ;;  %v163_v29 = vadd.f32 %v155_v17, %v103_v15 }
  0x8a   :  { %v105_v30 = vand.u32 2147483647, %v97_v21  ;;  %v157_v31 = vand.u32 2147483647, %v149_v22 }
  0x8b   :  { %v367_v39 = vpop.permute.xlu1 %85  ;;  %v369_v40 = vpop.permute.xlu0 %137 }
  0x8c   :  { %v99_v32 = vsub.f32 %v367_v39, %v91_v46  ;;  %v151_v33 = vsub.f32 %v369_v40, %v143_v49 }
  0x8e   :  { %v107_v38 = vand.u32 2147483647, %v99_v32  ;;  %v159_v41 = vand.u32 2147483647, %v151_v33 }
  0x90   :  { %v114_v42 = vpop.permute.xlu1 %113  ;;  %v51_v43 = vpop.permute.xlu0 %50  ;;  %v167_v45 = vadd.f32 %v159_v41, %v107_v38 }
  0x91   :  { %v145_v51 = vsub.f32 %v114_v42, %v143_v49  ;;  %v92_v52 = vsub.f32 %v51_v43, %v91_v46  ;;  %v165_v42 = vadd.f32 %v157_v31, %v105_v30 }
  0x93   :  { %v153_v59 = vand.u32 2147483647, %v145_v51  ;;  %v100_v60 = vand.u32 2147483647, %v92_v52 }
  0x94   :  { %v118_v47 = vpop.permute.xlu1 %117  ;;  %v56_v48 = vpop.permute.xlu0 %55 }
  0x95   :  { %v93_v50 = vsub.f32 %v56_v48, %v91_v46  ;;  %v146_v61 = vsub.f32 %v118_v47, %v143_v49  ;;  %v160_v11 = vadd.f32 %v152_v1, %v100_v60 }
  0x97   :  { %v101_v56 = vand.u32 2147483647, %v93_v50  ;;  %v154_v9 = vand.u32 2147483647, %v146_v61 }
  0x98   :  { %v126_v53 = vpop.permute.xlu1 %125  ;;  %v71_v54 = vpop.permute.xlu0 %70 }
  0x99   :  { %v148_v57 = vsub.f32 %v126_v53, %v143_v49  ;;  %v96_v58 = vsub.f32 %v71_v54, %v91_v46  ;;  %v161_v4 = vadd.f32 %v153_v59, %v101_v56  ;;  %v162_v24 = vadd.f32 %v154_v9, %v102_v14 }
  0x9b   :  { %v156_v5 = vand.u32 2147483647, %v148_v57  ;;  %v104_v6 = vand.u32 2147483647, %v96_v58 }
  0x9c   :  { %v134_v62 = vpop.permute.xlu1 %133  ;;  %v81_v63 = vpop.permute.xlu0 %80 }
  0x9d   :  { %v150_v7 = vsub.f32 %v134_v62, %v143_v49  ;;  %v98_v8 = vsub.f32 %v81_v63, %v91_v46  ;;  %v164_v20 = vadd.f32 %v156_v5, %v104_v6 }
  0x9f   :  { %v158_v18 = vand.u32 2147483647, %v150_v7  ;;  %v106_v19 = vand.u32 2147483647, %v98_v8 }
  0xa0   :  { %v184_v10 = vpop.permute.xlu0 %183 }
  0xa1   :  { %v217_v12 = vadd.f32 %v184_v10, %v161_v4  ;;  %v179_v13 = vpop.permute.xlu1 %178  ;;  %v166_v28 = vadd.f32 %v158_v18, %v106_v19 }
  0xa2   :  { %v216_v16 = vadd.f32 %v179_v13, %v160_v11 }
  0xa3   :  { %225 = vst [vmem:[#allocation7 + $0x8] sm:$0xff] %v217_v12 }
  0xa4   :  { %224 = vst [vmem:[#allocation7] sm:$0xff] %v216_v16  ;;  %v199_v23 = vpop.permute.xlu0 %198 }
  0xa5   :  { %v220_v25 = vadd.f32 %v199_v23, %v164_v20  ;;  %v189_v26 = vpop.permute.xlu1 %188 }
  0xa6   :  { %v218_v27 = vadd.f32 %v189_v26, %v162_v24 }
  0xa7   :  { %228 = vst [vmem:[#allocation7 + $0x20] sm:$0xff] %v220_v25 }
  0xa8   :  { %226 = vst [vmem:[#allocation7 + $0x10] sm:$0xff] %v218_v27  ;;  %v209_v34 = vpop.permute.xlu0 %208 }
  0xa9   :  { %v222_v35 = vadd.f32 %v209_v34, %v166_v28  ;;  %v194_v36 = vpop.permute.xlu1 %193 }
  0xaa   :  { %v219_v37 = vadd.f32 %v194_v36, %v163_v29 }
  0xab   :  { %230 = vst [vmem:[#allocation7 + $0x30] sm:$0xff] %v222_v35 }
  0xac   :  { %227 = vst [vmem:[#allocation7 + $0x18] sm:$0xff] %v219_v37 }
  0xad   :  { %v204_v43 = vpop.permute.xlu1 %203 }
  0xae   :  { %v221_v44 = vadd.f32 %v204_v43, %v165_v42 }
  0xb0   :  { %229 = vst [vmem:[#allocation7 + $0x28] sm:$0xff] %v221_v44 }
  0xb1   :  { %v214_v47 = vpop.permute.xlu1 %213 }
  0xb2   :  { %v223_v39 = vadd.f32 %v214_v47, %v167_v45 }
  0xb4   :  { %231 = vst [vmem:[#allocation7 + $0x38] sm:$0xff] %v223_v39 }
  0xb5   :  { %269 = shalt.err (!%p266_p4)
}
  0xb6   :  { %s283_s23 = smov 128   ;;  %s284_s24 = smov 8  }
  0xb7   :  { %243 = dma.vmem_to_hbm [thread:$0]  %s238_s3, 1024, %s382_s4, [#allocation8], %s283_s23, %s283_s23, %s284_s24  }
  0xb8   :  { %278 = dma.done.wait [#allocation8], 1024  }
  0xb9   :  { %279 = vsyncadd [#allocation8], 4294966272 }
  0xba   :  { %247 = vsyncpa [#allocation8], 1 }

</bundles_post_ra>
